<compile_context>
chip_gen: v5e
topology: v5e:2x2
jax: 0.10.0
libtpu: 0.0.40
codegen_flags: <defaults>
</compile_context>

<pallas_src>
import functools

import jax
import jax.numpy as jnp
from jax.experimental import pallas as pl
from jax.experimental.pallas import tpu as pltpu


def _linear_kernel(x_ref, w_ref, b_ref, o_ref, *, compute_dtype, precision):
    # x_ref: [TM, D_in], w_ref: [D_in, D_out_p], b_ref: [1, D_out_p], o_ref: [TM, D_out_p]
    x = x_ref[...].astype(compute_dtype)          # in-kernel cast (free; VMEM-local)
    acc = jnp.dot(x, w_ref[...],
                  preferred_element_type=jnp.float32,
                  precision=precision)
    o_ref[...] = (acc + b_ref[...].astype(jnp.float32)).astype(o_ref.dtype)


def _round_up(x: int, m: int) -> int:
    return ((x + m - 1) // m) * m


def _plan_tiles(M, D_in, D_out_p, x_isz, w_isz, out_isz):
    """Return (TM, vmem_limit_bytes), VMEM- and dtype-aware."""
    try:
        info = pltpu.get_tpu_info()
        vmem_cap = int(getattr(info, "vmem_capacity_bytes", 0)) or (64 << 20)
    except Exception:  # pragma: no cover - conservative fallback (assume v7x-sized VMEM)
        vmem_cap = 64 << 20

    # Pipeline-buffer budget: generous on 128-MiB chips, headroom-preserving on v7x.
    buf_budget = (48 << 20) if vmem_cap >= (96 << 20) else (24 << 20)

    # Weight/bias are grid-invariant but conservatively count them double-buffered.
    const_bytes = 2 * (D_in * D_out_p * w_isz + D_out_p * 4)
    per_row_bytes = 2 * D_out_p * out_isz + 2 * D_in * x_isz

    tm = max((buf_budget - const_bytes) // per_row_bytes, 8)
    # Diminishing returns past ~1024 f32 rows / ~2048 bf16 rows (per-step overhead
    # already <1-2% of tile time); also keeps compile-time tile sizes sane.
    max_rows = 1024 if out_isz >= 4 else 2048
    tm = min(tm, max_rows)
    tm = max((tm // 8) * 8, 8)

    if M <= tm:
        if M >= 16:
            # Guarantee >=2 grid steps so both v7x TensorCores get work.
            tm = max(8, _round_up(pl.cdiv(M, 2), 8))
        else:
            tm = M  # single full block (block dim == full array dim is always legal)

    need = (2 * tm * D_out_p * out_isz + 2 * tm * D_in * x_isz
            + const_bytes + (2 << 20))           # +2 MiB margin for internal scratch
    vmem_limit = max(need, 16 << 20)
    return tm, vmem_limit


def patch_encoder_forward(patches, weight, bias, *, io_dtype=None):
    """patches: [B, S, D_in]; weight: [D_in, D_out]; bias: [D_out] -> [B, S, D_out].

    io_dtype: optional dtype (e.g. jnp.bfloat16) for weight/compute/output to halve
    HBM traffic (output bytes dominate); MXU accumulation remains float32.
    """
    B, S, D_in = patches.shape
    D_out = weight.shape[1]
    M = B * S

    out_dtype = patches.dtype if io_dtype is None else io_dtype
    compute_dtype = patches.dtype if io_dtype is None else io_dtype
    precision = jax.lax.Precision.HIGHEST if io_dtype is None else None

    if io_dtype is not None:
        # Only cast the (tiny) weight in the wrapper; x is cast inside the kernel to
        # avoid an extra un-fused HBM pass over the activations. Bias stays f32 and
        # is added in the f32 accumulator.
        weight = weight.astype(io_dtype)

    # Lane-dense output: pad D_out to a multiple of 128 when needed (avoids masked
    # vst.msk partial stores). Real AuraFlow D_out=3072 needs no padding.
    D_out_p = max(_round_up(D_out, 128), 128)
    if D_out_p != D_out:
        weight = jnp.pad(weight, ((0, 0), (0, D_out_p - D_out)))
        bias = jnp.pad(bias, ((0, D_out_p - D_out),))

    x2d = patches.reshape(M, D_in)
    b2d = bias.reshape(1, D_out_p)

    x_isz = jnp.dtype(x2d.dtype).itemsize
    w_isz = jnp.dtype(weight.dtype).itemsize
    out_isz = jnp.dtype(out_dtype).itemsize

    TM, vmem_limit = _plan_tiles(M, D_in, D_out_p, x_isz, w_isz, out_isz)
    grid = (pl.cdiv(M, TM),)

    in_bytes = M * D_in * x_isz + D_in * D_out_p * w_isz + D_out_p * 4
    out_bytes = M * D_out_p * out_isz
    cost = pl.CostEstimate(
        flops=2 * M * D_in * D_out_p,
        transcendentals=0,
        bytes_accessed=in_bytes + out_bytes,
    )

    kernel = functools.partial(_linear_kernel,
                               compute_dtype=compute_dtype,
                               precision=precision)

    out2d = pl.pallas_call(
        kernel,
        out_shape=jax.ShapeDtypeStruct((M, D_out_p), out_dtype),
        grid=grid,
        in_specs=[
            # Streamed row tiles: double-buffered by the Pallas pipeline (default
            # Buffered(2) is optimal here — deeper buffering can't beat HBM roofline).
            pl.BlockSpec((TM, D_in), lambda i: (i, 0)),
            # Weight / bias: constant block index -> fetched once, VMEM-resident.
            pl.BlockSpec((D_in, D_out_p), lambda i: (0, 0)),
            pl.BlockSpec((1, D_out_p), lambda i: (0, 0)),
        ],
        # Full (padded) D_out per tile: lane-dense stores, no N-axis weight revisits.
        out_specs=pl.BlockSpec((TM, D_out_p), lambda i: (i, 0)),
        compiler_params=pltpu.CompilerParams(
            dimension_semantics=("parallel",),  # row axis independent -> megacore
            vmem_limit_bytes=int(vmem_limit),
        ),
        cost_estimate=cost,
    )(x2d, weight, b2d)

    if D_out_p != D_out:
        out2d = out2d[:, :D_out]
    return out2d.reshape(B, S, D_out)


if __name__ == "__main__":
    # Small, self-consistent config (DenoiserConfig stand-in):
    #   patch_size = 2, in_channels = 4   -> D_in  = 2*2*4 = 16
    #   attention_head_dim = 8, num_attention_heads = 4 -> inner_dim = 32
    patch_size = 2
    in_channels = 4
    attention_head_dim = 8
    num_attention_heads = 4

    D_in = patch_size * patch_size * in_channels            # 16
    inner_dim = attention_head_dim * num_attention_heads    # 32

    B, S = 2, 8

    key = jax.random.PRNGKey(0)
    k_x, k_w, k_b = jax.random.split(key, 3)

    # Deterministic parameter init (nn.Linear-style uniform bounds).
    bound = 1.0 / (D_in ** 0.5)
    weight = jax.random.uniform(k_w, (D_in, inner_dim), jnp.float32, -bound, bound)
    bias = jax.random.uniform(k_b, (inner_dim,), jnp.float32, -bound, bound)

    patches = jax.random.normal(k_x, (B, S, D_in), jnp.float32)

    # --- f32 path (precision=HIGHEST -> matches PyTorch nn.Linear f32 numerics) ---
    out = patch_encoder_forward(patches, weight, bias)
    jax.block_until_ready(out)

    ref = patches @ weight + bias
    assert out.shape == (B, S, inner_dim)
    assert out.dtype == jnp.float32
    assert jnp.allclose(out, ref, atol=1e-5, rtol=1e-5)

    # --- bf16 I/O path (bandwidth optimization): x cast in-kernel, weight bf16,
    #     bias added in f32, output bf16 ---
    out_bf16 = patch_encoder_forward(patches, weight, bias, io_dtype=jnp.bfloat16)
    jax.block_until_ready(out_bf16)
    ref_bf16 = (
        patches.astype(jnp.bfloat16).astype(jnp.float32)
        @ weight.astype(jnp.bfloat16).astype(jnp.float32)
        + bias
    )
    assert out_bf16.shape == (B, S, inner_dim)
    assert out_bf16.dtype == jnp.bfloat16
    assert jnp.allclose(out_bf16.astype(jnp.float32), ref_bf16, atol=3e-2, rtol=3e-2)

    print("KERNEL_OK")
</pallas_src>

<mosaic_0001>
module attributes {stable_mosaic.version = 11 : i64} {
  func.func @_linear_kernel(%arg0: i32, %arg1: memref<8x16xf32, #tpu.memory_space<vmem>>, %arg2: memref<16x128xf32, #tpu.memory_space<vmem>>, %arg3: memref<1x128xf32, #tpu.memory_space<vmem>>, %arg4: memref<8x128xf32, #tpu.memory_space<vmem>>) attributes {dimension_semantics = [#tpu.dimension_semantics<parallel>], iteration_bounds = array<i64: 2>, scalar_prefetch = 0 : i64, scratch_operands = 0 : i64, tpu.core_type = #tpu.core_type<tc>, window_params = [{transform_indices = @transform_0, window_bounds = array<i64: 8, 16>}, {pipeline_mode = #tpu.pipeline_mode<synchronous>, transform_indices = @transform_1, window_bounds = array<i64: 16, 128>}, {pipeline_mode = #tpu.pipeline_mode<synchronous>, transform_indices = @transform_2, window_bounds = array<i64: 1, 128>}, {transform_indices = @transform_3, window_bounds = array<i64: 8, 128>}]} {
    %c0 = arith.constant 0 : index
    %c0_0 = arith.constant 0 : index
    %0 = vector.load %arg1[%c0, %c0_0] : memref<8x16xf32, #tpu.memory_space<vmem>>, vector<8x16xf32>
    %c0_1 = arith.constant 0 : index
    %c0_2 = arith.constant 0 : index
    %1 = vector.load %arg2[%c0_1, %c0_2] : memref<16x128xf32, #tpu.memory_space<vmem>>, vector<16x128xf32>
    %cst = arith.constant dense<0.000000e+00> : vector<8x128xf32>
    %2 = tpu.matmul %0, %1, %cst {dimension_numbers = #tpu.dot_dimension_numbers<[1], [0], [0], [1], [0, 0, 1, 1], [], []>, precision = #tpu.contract_precision<fp32>} : vector<8x16xf32>, vector<16x128xf32>, vector<8x128xf32> -> vector<8x128xf32>
    %c0_3 = arith.constant 0 : index
    %c0_4 = arith.constant 0 : index
    %3 = vector.load %arg3[%c0_3, %c0_4] : memref<1x128xf32, #tpu.memory_space<vmem>>, vector<1x128xf32>
    %4 = vector.broadcast %3 : vector<1x128xf32> to vector<8x128xf32>
    %5 = arith.addf %2, %4 : vector<8x128xf32>
    %c0_5 = arith.constant 0 : index
    %c0_6 = arith.constant 0 : index
    %6 = vector.load %arg4[%c0_5, %c0_6] : memref<8x128xf32, #tpu.memory_space<vmem>>, vector<8x128xf32>
    tpu.vector_store %arg4[%c0_5, %c0_6], %5 {strides = array<i32>} : memref<8x128xf32, #tpu.memory_space<vmem>>, vector<8x128xf32>,
    return
  }
  func.func @transform_0(%arg0: i32) -> (i32, i32) {
    %c0_i32 = arith.constant 0 : i32
    %c0_i32_0 = arith.constant 0 : i32
    return %arg0, %c0_i32 : i32, i32
  }
  func.func @transform_1(%arg0: i32) -> (i32, i32) {
    %c0_i32 = arith.constant 0 : i32
    %c0_i32_0 = arith.constant 0 : i32
    %c0_i32_1 = arith.constant 0 : i32
    return %c0_i32, %c0_i32_0 : i32, i32
  }
  func.func @transform_2(%arg0: i32) -> (i32, i32) {
    %c0_i32 = arith.constant 0 : i32
    %c0_i32_0 = arith.constant 0 : i32
    %c0_i32_1 = arith.constant 0 : i32
    return %c0_i32, %c0_i32_0 : i32, i32
  }
  func.func @transform_3(%arg0: i32) -> (i32, i32) {
    %c0_i32 = arith.constant 0 : i32
    %c0_i32_0 = arith.constant 0 : i32
    return %arg0, %c0_i32 : i32, i32
  }
}

</mosaic_0001>

<bundles_post_ra>
// kernel: tpu_custom_call.1
= control target key start
LH: loop header
LB: loop body
LE: loop exit
PB: predicated region body
PF: predicated region fallthrough
CT: control target
= control target key end

     0   :  { %8 = vsyncpa [#allocation3], 0  ;;  %s844_s0 = inlined_call_operand.hbm [shape: f32[16,16], index: 0, kind: input, shape index: {}]   ;;  %s845_s1 = inlined_call_operand.hbm [shape: f32[16,128], index: 1, kind: input, shape index: {}]   ;;  %s846_s2 = inlined_call_operand.vmem [shape: f32[1,128], index: 2, kind: input, shape index: {}]   ;;  %s847_s3 = inlined_call_operand.hbm [shape: f32[16,128], index: 3, kind: output, shape index: {}]  }
   0x1   :  { %10 = vsyncpa [#allocation3 + $0x1], 0 }
   0x2   :  { %11 = vsyncpa [#allocation6], 0 }
   0x3   :  { %12 = vsyncpa [#allocation4], 0 }
   0x4   :  { %14 = vsyncpa [#allocation4 + $0x1], 0  ;;  %s701_s12 = smov 0   ;;  %s703_s13 = smov 0  }
   0x5   :  { %s705_s14 = smov 0   ;;  %s707_s15 = smov 0  }
   0x6 LB: > { %s130_s18 = sshll.u32 %s845_s1, 4  ;;  %s725_s19 = sadd.s32 4294967295, %s676_s15   ;;  %s676_s15 = sphi %s707_s15, %s857_s15   ;;  %s672_s14 = sphi %s705_s14, %s856_s14   ;;  %s668_s13 = sphi %s703_s13, %s855_s13   ;;  %s664_s12 = sphi %s701_s12, %s854_s12   ;;  %s131_s18 = int_to_ptr.hbm [resolvable:$true] %s130_s18 }
   0x7   : > { %p473_p0 = scmp.ge.s32.totalorder %s676_s15, 1  ;;  %p41_p1 = scmp.eq.s32.totalorder %s725_s19, 0 }
   0x8   : > { %p119_p2 = scmp.lt.s32.totalorder %s676_s15, 3  ;;  %s678_s21 = smov [#allocation5]  }
   0x9   : > { %s132_s22 = sshll.u32 %s678_s21, 4  ;;  %s679_s23 = smov 128   ;;  %s133_s22 = int_to_ptr.vmem [resolvable:$true] %s132_s22 }
   0xa   : > { %p730_p3 = pnand %p473_p0, %p119_p2  ;;  %s680_s24 = smov 8  }
   0xb   : > { %s472_s25 = sadd.s32 4294967294, %s676_s15   ;;  %s741_s26 = sadd.s32 1, %s676_s15  }
   0xc   : > { %p494_p4 = pneg %p730_p3  ;;  %s27_s27 = sadd.s32 1, %s672_s14 }
   0xd   : > { %s24_s28 = ssub.s32 %s676_s15, %s741_s26  ;;  %p34_p7 = scmp.ne.s32.totalorder %s672_s14, %s668_s13 }
   0xe   : > { %p495_p6 = pnand %p494_p4, %p41_p1  ;;  %p25_p8 = scmp.eq.s32.totalorder %s24_s28, 0 }
   0xf   : > { %p35_p9 = scmp.eq.s32.totalorder %s676_s15, 0  ;;  %p40_p10 = scmp.ne.s32.totalorder %s668_s13, %s664_s12 }
  0x10   : > { %497 = dma.hbm_to_vmem [thread:$0]  (!%p495_p6), %s131_s18, 256, %s133_s22, [#allocation6], %s679_s23, %s679_s23, %s680_s24  }
  0x11   : > { %p106_p11 = scmp.eq.s32.totalorder %s725_s19, 1  ;;  %p757_p12 = por %p41_p1, %p40_p10 }
  0x12   : > { %s753_s29 = scalar_select %p25_p8, %s672_s14, %s27_s27  }
  0x13   : > { %p761_p13 = por %p106_p11, %p34_p7  ;;  %p112_p0 = scmp.eq.s32.totalorder %s472_s25, 1 }
  0x14   : > { %p36_p2 = por %p35_p9, %p34_p7  ;;  %s149_s5 = sand.u32 1, %s672_s14  }
  0x15   : > { %p766_p4 = por %p112_p0, %p40_p10  ;;  %p507_p6 = scmp.lt.s32.totalorder %s676_s15, 2 }
  0x16   : > { %s476_s7 = sshll.u32 %s149_s5, 3  ;;  %s477_s8 = sshll.u32 %s676_s15, 3 }
  0x17   : > { %s157_s11 = scalar_lea.hbm %s844_s0, %s477_s8  ;;  %s153_s17 = scalar_lea.vmem [#allocation2], %s476_s7 }
  0x18   : > { %s159_s16 = sshll.u32 %s157_s11, 4  ;;  %s161_s18 = sshll.u32 %s153_s17, 4  ;;  %s160_s16 = int_to_ptr.hbm [resolvable:$true] %s159_s16  ;;  %s162_s18 = int_to_ptr.vmem [resolvable:$true] %s161_s18 }
  0x19   : > { %p775_p8 = pnand %p507_p6, %p36_p2  ;;  %s150_s22 = scalar_lea.sflag [#allocation3], %s149_s5 }
  0x1a   : > { %s576_s23 = sshra.s32 %s160_s16, 4  ;;  %s583_s28 = scalar_lea.hbm %s844_s0, 16  ;;  %s577_s23 = int_to_ptr.hbm [resolvable:$true] %s576_s23 }
  0x1b   : > { %s578_s24 = scalar_lea.hbm %s577_s23, 8  ;;  %p580_p9 = pneg %p775_p8 }
  0x1c   : > { %p579_p7 = scmp.ne.s32.totalorder %s577_s23, %s578_s24  ;;  %p584_p0 = scmp.lt.s32.totalorder %s577_s23, %s844_s0 }
  0x1d   : > { %p585_p2 = scmp.lt.s32.totalorder %s583_s28, %s578_s24 }
  0x1e   : > { %p581_p10 = pnand %p580_p9, %p579_p7 }
  0x1f   : > { %p586_p6 = por %p585_p2, %p584_p0 }
  0x20   : > { %p582_p11 = pneg %p581_p10 }
  0x22   : > { %p587_p5 = pnand %p586_p6, %p582_p11 }
  0x24   : > { %590 = shalt.err (!%p587_p5)
}
  0x25   : > { %501 = dma.hbm_to_vmem [thread:$0]  (!%p775_p8), %s160_s16, 128, %s162_s18, %s150_s22  }
  0x26   : > { %170 = sbr.rel (%p730_p3) target bundleno = 200 (0xc8), region = 32  ;;  %s792_s5 = sand.u32 (!%p730_p3), 1, %s668_s13  }
  0x27   : > { %s479_s9 = sshll.u32 (!%p730_p3), %s792_s5, 3  ;;  %s173_s10 = scalar_lea.sflag (!%p730_p3), [#allocation3], %s792_s5 }
  0x28   : > { %s176_s11 = scalar_lea.vmem (!%p730_p3), [#allocation2], %s479_s9 }
  0x2b   : > { %651 = dma.done.wait (%p757_p12), %s173_s10, 128  }
  0x2c   : > { %653 = vsyncadd (%p757_p12), %s173_s10, 4294967168 }
  0x2d   : > { %655 = dma.done.wait (%p41_p1), [#allocation6], 256  }
  0x2e   : > { %657 = vsyncadd (%p41_p1), [#allocation6], 4294967040  ;;  %vm212_vm0 = vcmask 130048   ;;  %v207_v0 = vld [vmem:[#allocation5 + $0x8] sm:$0xff]  ;;  %v206_v1 = vld [vmem:[#allocation5] sm:$0xff]  ;;  %s483_s16 = sshll.u32 %s725_s19, 3 }
  0x2f   : > { %v205_v2 = vld [vmem:[%s176_s11] sm:$0xff]  ;;  %v230_v3 = vand.u32 4294901760, %v207_v0  ;;  %v232_v4 = vand.u32 4294901760, %v206_v1  ;;  %s387_s21 = scalar_lea.hbm %s847_s3, %s483_s16  ;;  %s204_s22 = scalar_lea.vmem [#allocation7], %s479_s9 }
  0x30   : > { %v214_v5 = vsel %vm212_vm0, %v205_v2, 0  ;;  %v545_v19 = vld [vmem:[%s846_s2] ss:$0 sm:$0xff]  ;;  %s389_s23 = sshll.u32 %s204_s22, 4  ;;  %s391_s24 = sshll.u32 %s387_s21, 4  ;;  %s390_s23 = int_to_ptr.vmem [resolvable:$true] %s389_s23  ;;  %s392_s24 = int_to_ptr.hbm [resolvable:$true] %s391_s24 }
  0x31   : > { %v234_v6 = vand.u32 4294901760, %v214_v5  ;;  %v258_v7 = vsub.f32 %v207_v0, %v230_v3  ;;  %231 = vmatpush.msra.mxu0 %v230_v3  ;;  %v264_v8 = vsub.f32 %v206_v1, %v232_v4  ;;  %315 = vmatpush.msra.mxu3 %v230_v3  ;;  %s377_s19 = scalar_lea.sflag [#allocation4], %s792_s5  ;;  %s620_s25 = sshra.s32 %s392_s24, 4  ;;  %s621_s25 = int_to_ptr.hbm [resolvable:$true] %s620_s25 }
  0x32   : > { %s622_s27 = scalar_lea.hbm %s621_s25, 8  ;;  %s626_s8 = scalar_lea.hbm %s847_s3, 16 }
  0x33   : > { %v235_v9 = vsub.f32 %v214_v5, %v234_v6  ;;  %290 = vmatpush.msra.mxu2 %v258_v7  ;;  %233 = vmatpush.msra.mxu0 %v232_v4  ;;  %v259_v10 = vand.u32 4294901760, %v258_v7  ;;  %v265_v11 = vand.u32 4294901760, %v264_v8  ;;  %p623_p1 = scmp.ne.s32.totalorder %s621_s25, %s622_s27  ;;  %p627_p12 = scmp.lt.s32.totalorder %s621_s25, %s847_s3 }
  0x34   : > { %317 = vmatpush.msra.mxu3 %v232_v4  ;;  %p628_p8 = scmp.lt.s32.totalorder %s626_s8, %s622_s27 }
  0x35   : > { %v236_v12 = vand.u32 4294901760, %v235_v9  ;;  %293 = vmatpush.msra.mxu2 %v264_v8  ;;  %v260_v13 = vsub.f32 %v258_v7, %v259_v10  ;;  %342 = vmatpush.msrb.mxu0 %v259_v10  ;;  %v266_v14 = vsub.f32 %v264_v8, %v265_v11  ;;  %p624_p3 = pnand %p623_p1, %p761_p13 }
  0x36   : > { %296 = vmatmul.f32.vlgmr.msra.gmra.mxu2 %v235_v9  ;;  %p629_p7 = por %p628_p8, %p627_p12 }
  0x37   : > { %v237_v15 = vsub.f32 %v235_v9, %v236_v12  ;;  %321 = vmatmul.f32.vlgmr.msra.gmra.mxu3 %v236_v12  ;;  %v261_v16 = vand.u32 4294901760, %v260_v13  ;;  %v267_v17 = vand.u32 4294901760, %v266_v14  ;;  %346 = vmatpush.msrb.mxu0 %v265_v11  ;;  %p625_p5 = pneg %p624_p3 }
  0x39   : > { %v238_v18 = vand.u32 4294901760, %v237_v15  ;;  %262 = vmatpush.msra.mxu1 %v261_v16  ;;  %p630_p9 = pnand %p629_p7, %p625_p5 }
  0x3b   : > { %239 = vmatmul.f32.vlgmr.msra.gmra.mxu0 %v238_v18  ;;  %268 = vmatpush.msra.mxu1 %v267_v17 }
  0x3c   : > { %270 = vmatmul.f32.vlgmr.msra.gmra.mxu1 %v234_v6 }
  0x3d   : > { %367 = vmatpush.msrb.mxu1 %v230_v3 }
  0x3f   : > { %369 = vmatpush.msrb.mxu1 %v232_v4 }
  0x43   : > { %348 = vmatmul.f32.vlgmr.msrb.gmra.mxu0 %v234_v6 }
  0x44   : > { %371 = vmatmul.f32.vlgmr.msrb.gmra.mxu1 %v234_v6 }
  0xb8   : > { %v240_v20 = vpop.f32.mrf.mxu0 }
  0xb9   : > { %v241_v21 = vadd.f32 %v545_v19, %v240_v20  ;;  %v271_v22 = vpop.f32.mrf.mxu1  ;;  %v297_v23 = vpop.f32.mrf.mxu2 }
  0xba   : > { %v322_v25 = vpop.f32.mrf.mxu3 }
  0xbb   : > { %v272_v24 = vadd.f32 %v271_v22, %v241_v21 }
  0xbd   : > { %v298_v26 = vadd.f32 %v297_v23, %v272_v24 }
  0xbf   : > { %v323_v27 = vadd.f32 %v322_v25, %v298_v26 }
  0xc0   : > { %v349_v28 = vpop.f32.mrf.mxu0 }
  0xc1   : > { %v350_v29 = vadd.f32 %v349_v28, %v323_v27  ;;  %v372_v30 = vpop.f32.mrf.mxu1 }
  0xc3   : > { %v373_v31 = vadd.f32 %v372_v30, %v350_v29 }
  0xc5   : > { %375 = vst [vmem:[%s204_s22] sm:$0xff] %v373_v31 }
  0xc6   : > { %633 = shalt.err (!%p630_p9)
}
  0xc7   : > { %492 = dma.vmem_to_hbm [thread:$0]  (%p761_p13), %s390_s23, 128, %s392_s24, %s377_s19  }
  0xc8 PF: > { %s403_s5 = sand.u32 1, %s664_s12   ;;  %p853_p10 = scmp.ge.s32.totalorder %s676_s15, 2 }
  0xc9   : > { %s404_s11 = scalar_lea.sflag [#allocation4], %s403_s5 }
  0xca   : > { %p503_p11 = pnand %p853_p10, %p766_p4 }
  0xcc   : > { %p504_p0 = pneg %p503_p11 }
  0xce   : > { %659 = dma.done.wait (%p504_p0), %s404_s11, 128  }
  0xcf   : > { %661 = vsyncadd (%p504_p0), %s404_s11, 4294967168  ;;  %p17_p2 = scmp.ge.s32.totalorder %s741_s26, 4   ;;  %s854_s12 = smov %s668_s13 }
  0xd0   : > { %s855_s13 = smov %s672_s14  ;;  %s856_s14 = smov %s753_s29 }
  0xd1   : > { %s857_s15 = smov %s741_s26  ;;  %19 = sbr.rel (!%p17_p2) target bundleno = 6 (0x6), region = 81 }
  0xd6   :  { %410 = vsyncpa [#allocation3], 1 }
  0xd7   :  { %412 = vsyncpa [#allocation3 + $0x1], 1 }
  0xd8   :  { %413 = vsyncpa [#allocation6], 1 }
  0xd9   :  { %414 = vsyncpa [#allocation4], 1 }
  0xda   :  { %416 = vsyncpa [#allocation4 + $0x1], 1 }

</bundles_post_ra>
